<compile_context>
chip_gen: v7x
topology: tpu7x:2x2x1
jax: 0.10.0
libtpu: 0.0.40
codegen_flags: <defaults>
</compile_context>

<pallas_src>
import jax
import jax.numpy as jnp
from jax.experimental import pallas as pl
from jax.experimental.pallas import tpu as pltpu


def _constant_actor_kernel(obs_ref, action_ref, out_ref):
    # Observation is intentionally unused (matches PyTorch: forward(obs)
    # returns the constant action). It lives in pl.ANY space -> never DMA'd.
    del obs_ref
    out_ref[...] = action_ref[...]


def constant_actor_forward(obs: jax.Array, action: jax.Array) -> jax.Array:
    """Returns action[None, :] (i.e. action.unsqueeze(0)), computed in Pallas."""
    assert action.ndim == 1, "action is a 1-D action vector"
    action_2d = action.reshape(1, action.shape[0])  # glue reshape in plain JAX

    return pl.pallas_call(
        _constant_actor_kernel,
        out_shape=jax.ShapeDtypeStruct((1, action.shape[0]), action.dtype),
        # No grid: single invocation, no pipeline machinery.
        in_specs=[
            # obs: leave in place (HBM), never touched, zero DMA traffic.
            pl.BlockSpec(memory_space=pl.ANY),
            # action: whole (1, action_dim) array in VMEM (full-array block,
            # so no (8,128) divisibility requirement).
            pl.BlockSpec(memory_space=pltpu.MemorySpace.VMEM),
        ],
        out_specs=pl.BlockSpec(memory_space=pltpu.MemorySpace.VMEM),
        # Output buffer is the action input buffer: no separate output
        # allocation / extra HBM writeback target.
        input_output_aliases={1: 0},
    )(obs, action_2d)


if __name__ == "__main__":
    key = jax.random.PRNGKey(0)
    k_obs, k_act = jax.random.split(key)

    batch, obs_dim, action_dim = 2, 32, 8

    # Deterministic "parameters": the constant action held by ConstantActor.
    action = jax.random.normal(k_act, (action_dim,), dtype=jnp.float32)
    # Example observation (ignored by the forward pass, as in PyTorch).
    obs = jax.random.normal(k_obs, (batch, obs_dim), dtype=jnp.float32)

    # Reference computed up-front (robust even if the aliased input is donated).
    ref = action[None, :]
    ref = jax.block_until_ready(ref)

    out = constant_actor_forward(obs, action)
    out = jax.block_until_ready(out)

    assert out.shape == (1, action_dim), out.shape
    assert out.dtype == action.dtype, out.dtype
    assert jnp.allclose(out, ref), "mismatch vs reference"

    print("KERNEL_OK")
</pallas_src>

<mosaic_0001>
module attributes {stable_mosaic.version = 11 : i64} {
  func.func @_constant_actor_kernel(%arg0: memref<2x32xf32, #tpu.memory_space<any>>, %arg1: memref<1x8xf32, #tpu.memory_space<vmem>>, %arg2: memref<1x8xf32, #tpu.memory_space<vmem>>) attributes {dimension_semantics = [], scalar_prefetch = 0 : i64, scratch_operands = 0 : i64, tpu.core_type = #tpu.core_type<tc>} {
    %c0 = arith.constant 0 : index
    %c0_0 = arith.constant 0 : index
    %0 = vector.load %arg1[%c0, %c0_0] : memref<1x8xf32, #tpu.memory_space<vmem>>, vector<1x8xf32>
    %c0_1 = arith.constant 0 : index
    %c0_2 = arith.constant 0 : index
    %1 = vector.load %arg2[%c0_1, %c0_2] : memref<1x8xf32, #tpu.memory_space<vmem>>, vector<1x8xf32>
    tpu.vector_store %arg2[%c0_1, %c0_2], %0 {strides = array<i32>} : memref<1x8xf32, #tpu.memory_space<vmem>>, vector<1x8xf32>,
    return
  }
}

</mosaic_0001>

<bundles_post_ra>
// kernel: tpu_custom_call.1
= control target key start
LH: loop header
LB: loop body
LE: loop exit
PB: predicated region body
PF: predicated region fallthrough
CT: control target
= control target key end

     0   :  { %7 = vsyncpa [#allocation3], 0  ;;  %s131_s0 = inlined_call_operand.vmem [shape: f32[2,32], index: 0, kind: input, shape index: {}]   ;;  %s132_s1 = inlined_call_operand.hbm [shape: f32[1,8], index: 1, kind: input, shape index: {}, may-alias: {1,2}]   ;;  %s133_s2 = inlined_call_operand.hbm [shape: f32[1,8], index: 2, kind: output, shape index: {}, may-alias: {1,2}]  }
   0x1   :  { %8 = vsyncpa [#allocation4], 0  ;;  %s90_s9 = smov [#allocation2]   ;;  %s42_s13 = scalar_lea.hbm %s132_s1, 16 }
   0x2   :  { %s15_s10 = sshll.u32 %s90_s9, 4  ;;  %p43_p0 = scmp.ne.s32.totalorder %s132_s1, %s42_s13  ;;  %s16_s10 = int_to_ptr.vmem [resolvable:$true] %s15_s10 }
   0x3   :  { %p46_p1 = scmp.lt.u32.totalorder %s42_s13, %s132_s1 }
   0x5   :  { %p48_p2 = pnand %p46_p1, %p43_p0 }
   0x7   :  { %51 = shalt.err (!%p48_p2)
}
   0x8   :  { %s52_s17 = scalar_lea.vmem %s16_s10, 16  ;;  %s56_s18 = scalar_lea.vmem %s16_s10, 32 }
   0x9   :  { %p53_p3 = scmp.ne.s32.totalorder %s16_s10, %s52_s17  ;;  %p57_p4 = scmp.lt.s32.totalorder %s16_s10, %s16_s10 }
   0xa   :  { %p58_p5 = scmp.lt.s32.totalorder %s56_s18, %s52_s17 }
   0xc   :  { %p59_p6 = por %p58_p5, %p57_p4 }
   0xe   :  { %p60_p7 = pnand %p59_p6, %p53_p3 }
  0x10   :  { %63 = shalt.err (!%p60_p7)
}
  0x11   :  { %18 = dma.hbm_to_vmem [thread:$0]  %s132_s1, 16, %s16_s10, [#allocation3]  }
  0x12   :  { %86 = dma.done.wait [#allocation3], 16  }
  0x13   :  { %87 = vsyncadd [#allocation3], 4294967280  ;;  %s91_s21 = smov [#allocation5]   ;;  %vm23_vm0 = vcmask 57344   ;;  %v22_v0 = vld [vmem:[#allocation2] sm:$0x1] }
  0x14   :  { %s31_s22 = sshll.u32 %s91_s21, 4  ;;  %24 = vst.msk [vmem:[#allocation5] sm:$0x1] %vm23_vm0, %v22_v0  ;;  %s32_s22 = int_to_ptr.vmem [resolvable:$true] %s31_s22 }
  0x15   :  { %s64_s23 = scalar_lea.vmem %s32_s22, 16  ;;  %s68_s24 = scalar_lea.vmem %s32_s22, 32 }
  0x16   :  { %p65_p8 = scmp.ne.s32.totalorder %s32_s22, %s64_s23  ;;  %p69_p9 = scmp.lt.s32.totalorder %s32_s22, %s32_s22 }
  0x17   :  { %p70_p10 = scmp.lt.s32.totalorder %s68_s24, %s64_s23 }
  0x19   :  { %p71_p11 = por %p70_p10, %p69_p9 }
  0x1b   :  { %p72_p12 = pnand %p71_p11, %p65_p8 }
  0x1d   :  { %75 = shalt.err (!%p72_p12)
}
  0x1e   :  { %s76_s1 = scalar_lea.hbm %s133_s2, 16 }
  0x1f   :  { %p77_p13 = scmp.ne.s32.totalorder %s133_s2, %s76_s1  ;;  %p80_p0 = scmp.lt.u32.totalorder %s76_s1, %s133_s2 }
  0x21   :  { %p82_p1 = pnand %p80_p0, %p77_p13 }
  0x23   :  { %85 = shalt.err (!%p82_p1)
}
  0x24   :  { %34 = dma.vmem_to_hbm [thread:$0]  %s32_s22, 16, %s133_s2, [#allocation4]  }
  0x25   :  { %88 = dma.done.wait [#allocation4], 16  }
  0x26   :  { %89 = vsyncadd [#allocation4], 4294967280 }
  0x27   :  { %38 = vsyncpa [#allocation3], 1 }
  0x28   :  { %39 = vsyncpa [#allocation4], 1 }

</bundles_post_ra>
